<compile_context>
chip_gen: v7x
topology: tpu7x:2x2x1
jax: 0.10.0
libtpu: 0.0.40
codegen_flags: <defaults>
</compile_context>

<pallas_src>
import functools

import jax
import jax.numpy as jnp
from jax import lax
from jax.experimental import pallas as pl
from jax.experimental.pallas import tpu as pltpu


def _round_up(v, m):
    return (v + m - 1) // m * m


# ---------------- Pallas kernel: fused conv + bias + ReLU (+ sliding max) ----------------

def _fused_conv_kernel(x_ref, w_ref, b_ref, o_ref, *,
                       taps, pool_shifts, l_sub, l_out, n_phases):
    # x_ref: (1, n_phases, C_in, L)  bf16  flattened stride-phase copies (virtual width)
    # w_ref: (k*k, C_out, C_in)      bf16  one (C_out, C_in) matrix per tap
    # b_ref: (C_out, 1)              f32
    # o_ref: (1, C_out, l_out)       f32   lane-dense output tile (l_out % 128 == 0)
    acc = None
    for phase in range(n_phases):
        phase_taps = [(t, off) for (t, ph_idx, off) in taps if ph_idx == phase]
        if not phase_taps:
            continue
        xp = x_ref[0, phase]                                   # (C_in, L), full aligned read
        for (t, off) in phase_taps:
            # MXU matmul over the full flat row; bf16 inputs, f32 accumulation.
            prod = jnp.dot(w_ref[t], xp,
                           preferred_element_type=jnp.float32)  # (C_out, L) f32
            contrib = prod[:, off:off + l_sub]                  # static lane shift (f32)
            acc = contrib if acc is None else acc + contrib

    y = jnp.maximum(acc + b_ref[...], 0.0)                      # bias + ReLU in f32

    z = y[:, :l_out]
    if pool_shifts is not None:
        # Fused max-pool: sliding max over statically shifted slices.  The final
        # ::pool_stride subsample happens outside (cheap XLA strided slice).
        for sh in pool_shifts:
            if sh == 0:
                continue
            z = jnp.maximum(z, y[:, sh:sh + l_out])

    o_ref[0] = z.astype(o_ref.dtype)


# ---------------- wrapper: Conv2d -> ReLU -> MaxPool2d, NCHW in / NCHW out ----------------

def conv_relu_pool(x, weight, bias, stride, pad, max_pool):
    """x: (N, C_in, H, W) f32, weight: (C_out, C_in, k, k) f32, bias: (C_out,) f32."""
    N, C_in, H, W = x.shape
    C_out = weight.shape[0]
    k = weight.shape[2]
    s, p = stride, pad

    Hp, Wp = H + 2 * p, W + 2 * p
    oh = (Hp - k) // s + 1
    ow = (Wp - k) // s + 1
    Ws = -(-Wp // s)            # virtual row width of each stride-phase copy
    Hs = -(-Hp // s)

    if max_pool is not None:
        pk, ps = max_pool
        ph = (oh - pk) // ps + 1
        pw = (ow - pk) // ps + 1
        r_out = (ph - 1) * ps + 1
        max_pool_shift = (pk - 1) * (Ws + 1)
        pool_shifts = [di * Ws + dj for di in range(pk) for dj in range(pk)]
    else:
        r_out = oh
        max_pool_shift = 0
        pool_shifts = None

    l_out = _round_up(r_out * Ws, 128)                 # lane-dense output width
    max_off = ((k - 1) // s) * (Ws + 1)                # largest conv-tap lane shift
    L = _round_up(l_out + max_off + max_pool_shift, 128)
    l_sub = L - max_off

    # --- glue: zero-pad, stride-phase split, flatten to virtual-width rows (~1x input size) ---
    x_pad = jnp.pad(x, ((0, 0), (0, 0), (p, p), (p, p)))
    phases = []
    for ir in range(s):
        for jr in range(s):
            ximg = x_pad[:, :, ir::s, jr::s]
            hs_r, ws_r = ximg.shape[2], ximg.shape[3]
            ximg = jnp.pad(ximg, ((0, 0), (0, 0), (0, Hs - hs_r), (0, Ws - ws_r)))
            flat = ximg.reshape(N, C_in, Hs * Ws)
            if Hs * Ws < L:
                flat = jnp.pad(flat, ((0, 0), (0, 0), (0, L - Hs * Ws)))
            else:
                flat = flat[:, :, :L]
            phases.append(flat)
    n_phases = s * s
    x_stack = jnp.stack(phases, axis=1).astype(jnp.bfloat16)      # (N, s*s, C_in, L)

    # weight OIHW -> (k*k, C_out, C_in) so w_ref[t] is the tap-(i,j) matrix
    w_r = jnp.transpose(weight, (2, 3, 0, 1)).reshape(k * k, C_out, C_in)
    w_r = w_r.astype(jnp.bfloat16)
    b_r = bias.reshape(C_out, 1).astype(jnp.float32)

    # tap schedule: (tap index, stride phase, lane offset inside that phase)
    taps = []
    t = 0
    for i in range(k):
        for j in range(k):
            taps.append((t, (i % s) * s + (j % s), (i // s) * Ws + (j // s)))
            t += 1

    kernel = functools.partial(
        _fused_conv_kernel, taps=taps, pool_shifts=pool_shifts,
        l_sub=l_sub, l_out=l_out, n_phases=n_phases)

    out_flat = pl.pallas_call(
        kernel,
        out_shape=jax.ShapeDtypeStruct((N, C_out, l_out), jnp.float32),
        grid_spec=pltpu.PrefetchScalarGridSpec(
            num_scalar_prefetch=0,
            grid=(N,),
            in_specs=[
                pl.BlockSpec((1, n_phases, C_in, L), lambda n: (n, 0, 0, 0)),
                pl.BlockSpec((k * k, C_out, C_in), lambda n: (0, 0, 0)),
                pl.BlockSpec((C_out, 1), lambda n: (0, 0)),
            ],
            out_specs=pl.BlockSpec((1, C_out, l_out), lambda n: (n, 0, 0)),
        ),
        compiler_params=pltpu.CompilerParams(
            dimension_semantics=("parallel",),
            vmem_limit_bytes=32 * 1024 * 1024),
    )(x_stack, w_r, b_r)

    # --- glue: undo the virtual-width layout (single strided slice, reads output once) ---
    if max_pool is not None:
        z = out_flat[:, :, :r_out * Ws].reshape(N, C_out, r_out, Ws)
        y = z[:, :, ::ps, :(pw - 1) * ps + 1:ps]                  # (N, C_out, ph, pw)
    else:
        y = out_flat[:, :, :oh * Ws].reshape(N, C_out, oh, Ws)[:, :, :, :ow]
    return y


# ---------------- ConvLayer module ----------------

class ConvLayer:
    """JAX/Pallas equivalent of the PyTorch ConvLayer (Conv2d -> ReLU -> MaxPool2d?)."""

    def __init__(self, n_in, n_out, k_size, s, p, max_pool=None, *, key):
        kh = kw = k_size
        w_key, b_key = jax.random.split(key)
        fan_in = n_in * kh * kw
        bound = 1.0 / (fan_in ** 0.5)
        # PyTorch-style uniform init; weight is OIHW like nn.Conv2d.weight
        self.weight = jax.random.uniform(
            w_key, (n_out, n_in, kh, kw), jnp.float32, -bound, bound)
        self.bias = jax.random.uniform(
            b_key, (n_out,), jnp.float32, -bound, bound)
        self.k_size = k_size
        self.stride = s
        self.pad = p
        self.max_pool = max_pool  # (kernel, stride) or None

    def __call__(self, x):
        # x: (N, C_in, H, W) NCHW, output NCHW — no layout transposes anywhere.
        return conv_relu_pool(x, self.weight, self.bias,
                              self.stride, self.pad, self.max_pool)


# ---------------- reference (plain JAX) for verification ----------------

def reference(x, weight, bias, stride, pad, max_pool):
    # Same bf16-rounded inputs as the kernel, f32 math.
    xr = x.astype(jnp.bfloat16).astype(jnp.float32)
    wr = weight.astype(jnp.bfloat16).astype(jnp.float32)
    y = lax.conv_general_dilated(
        xr, wr, window_strides=(stride, stride),
        padding=((pad, pad), (pad, pad)),
        dimension_numbers=("NCHW", "OIHW", "NCHW"),
        precision=lax.Precision.HIGHEST)
    y = y + bias.reshape(1, -1, 1, 1)
    y = jnp.maximum(y, 0.0)
    if max_pool is not None:
        pk, ps = max_pool
        y = lax.reduce_window(
            y, -jnp.inf, lax.max,
            (1, 1, pk, pk), (1, 1, ps, ps), "VALID")
    return y


if __name__ == "__main__":
    key = jax.random.PRNGKey(0)
    x_key, p_key = jax.random.split(key)

    # Small shapes consistent with the module: batch=2, n_in=4, n_out=8,
    # spatial=16, k_size=3, stride=1, padding=1, max_pool=(2, 2).
    N, C_in, H, W = 2, 4, 16, 16
    C_out, k_size, stride, pad = 8, 3, 1, 1
    max_pool = (2, 2)

    x = jax.random.normal(x_key, (N, C_in, H, W), jnp.float32)
    layer = ConvLayer(C_in, C_out, k_size, stride, pad, max_pool=max_pool, key=p_key)

    fwd = jax.jit(layer.__call__)
    out = jax.block_until_ready(fwd(x))

    ref = reference(x, layer.weight, layer.bias, stride, pad, max_pool)
    assert out.shape == ref.shape == (N, C_out, H // 2, W // 2), (out.shape, ref.shape)
    assert jnp.allclose(out, ref, atol=1e-4, rtol=1e-4), \
        float(jnp.max(jnp.abs(out - ref)))

    print("KERNEL_OK")
</pallas_src>

<mosaic_0001>
module attributes {stable_mosaic.version = 11 : i64} {
  func.func @_fused_conv_kernel(%arg0: i32, %arg1: memref<1x1x4x512xbf16, #tpu.memory_space<vmem>>, %arg2: memref<9x8x4xbf16, #tpu.memory_space<vmem>>, %arg3: memref<8x1xf32, #tpu.memory_space<vmem>>, %arg4: memref<1x8x384xf32, #tpu.memory_space<vmem>>) attributes {dimension_semantics = [#tpu.dimension_semantics<parallel>], iteration_bounds = array<i64: 2>, scalar_prefetch = 0 : i64, scratch_operands = 0 : i64, tpu.core_type = #tpu.core_type<tc>, window_params = [{transform_indices = @transform_0, window_bounds = array<i64: 1, 1, 4, 512>}, {pipeline_mode = #tpu.pipeline_mode<synchronous>, transform_indices = @transform_1, window_bounds = array<i64: 9, 8, 4>}, {pipeline_mode = #tpu.pipeline_mode<synchronous>, transform_indices = @transform_2, window_bounds = array<i64: 8, 1>}, {transform_indices = @transform_3, window_bounds = array<i64: 1, 8, 384>}]} {
    %c0 = arith.constant 0 : index
    %c0_0 = arith.constant 0 : index
    %c0_1 = arith.constant 0 : index
    %c0_2 = arith.constant 0 : index
    %0 = vector.load %arg1[%c0, %c0_0, %c0_1, %c0_2] : memref<1x1x4x512xbf16, #tpu.memory_space<vmem>>, vector<1x1x4x512xbf16>
    %1 = vector.shape_cast %0 : vector<1x1x4x512xbf16> to vector<4x512xbf16>
    %c0_3 = arith.constant 0 : index
    %c0_4 = arith.constant 0 : index
    %c0_5 = arith.constant 0 : index
    %2 = vector.load %arg2[%c0_3, %c0_4, %c0_5] : memref<9x8x4xbf16, #tpu.memory_space<vmem>>, vector<1x8x4xbf16>
    %3 = vector.shape_cast %2 : vector<1x8x4xbf16> to vector<8x4xbf16>
    %cst = arith.constant dense<0.000000e+00> : vector<8x512xf32>
    %4 = tpu.matmul %3, %1, %cst {dimension_numbers = #tpu.dot_dimension_numbers<[1], [0], [0], [1], [0, 0, 1, 1], [], []>} : vector<8x4xbf16>, vector<4x512xbf16>, vector<8x512xf32> -> vector<8x512xf32>
    %5 = vector.extract_strided_slice %4 {offsets = [0, 0], sizes = [8, 474], strides = [1, 1]} : vector<8x512xf32> to vector<8x474xf32>
    %c1 = arith.constant 1 : index
    %c0_6 = arith.constant 0 : index
    %c0_7 = arith.constant 0 : index
    %6 = vector.load %arg2[%c1, %c0_6, %c0_7] : memref<9x8x4xbf16, #tpu.memory_space<vmem>>, vector<1x8x4xbf16>
    %7 = vector.shape_cast %6 : vector<1x8x4xbf16> to vector<8x4xbf16>
    %cst_8 = arith.constant dense<0.000000e+00> : vector<8x512xf32>
    %8 = tpu.matmul %7, %1, %cst_8 {dimension_numbers = #tpu.dot_dimension_numbers<[1], [0], [0], [1], [0, 0, 1, 1], [], []>} : vector<8x4xbf16>, vector<4x512xbf16>, vector<8x512xf32> -> vector<8x512xf32>
    %9 = vector.extract_strided_slice %8 {offsets = [0, 1], sizes = [8, 474], strides = [1, 1]} : vector<8x512xf32> to vector<8x474xf32>
    %10 = arith.addf %5, %9 : vector<8x474xf32>
    %c2 = arith.constant 2 : index
    %c0_9 = arith.constant 0 : index
    %c0_10 = arith.constant 0 : index
    %11 = vector.load %arg2[%c2, %c0_9, %c0_10] : memref<9x8x4xbf16, #tpu.memory_space<vmem>>, vector<1x8x4xbf16>
    %12 = vector.shape_cast %11 : vector<1x8x4xbf16> to vector<8x4xbf16>
    %cst_11 = arith.constant dense<0.000000e+00> : vector<8x512xf32>
    %13 = tpu.matmul %12, %1, %cst_11 {dimension_numbers = #tpu.dot_dimension_numbers<[1], [0], [0], [1], [0, 0, 1, 1], [], []>} : vector<8x4xbf16>, vector<4x512xbf16>, vector<8x512xf32> -> vector<8x512xf32>
    %14 = vector.extract_strided_slice %13 {offsets = [0, 2], sizes = [8, 474], strides = [1, 1]} : vector<8x512xf32> to vector<8x474xf32>
    %15 = arith.addf %10, %14 : vector<8x474xf32>
    %c3 = arith.constant 3 : index
    %c0_12 = arith.constant 0 : index
    %c0_13 = arith.constant 0 : index
    %16 = vector.load %arg2[%c3, %c0_12, %c0_13] : memref<9x8x4xbf16, #tpu.memory_space<vmem>>, vector<1x8x4xbf16>
    %17 = vector.shape_cast %16 : vector<1x8x4xbf16> to vector<8x4xbf16>
    %cst_14 = arith.constant dense<0.000000e+00> : vector<8x512xf32>
    %18 = tpu.matmul %17, %1, %cst_14 {dimension_numbers = #tpu.dot_dimension_numbers<[1], [0], [0], [1], [0, 0, 1, 1], [], []>} : vector<8x4xbf16>, vector<4x512xbf16>, vector<8x512xf32> -> vector<8x512xf32>
    %19 = vector.extract_strided_slice %18 {offsets = [0, 18], sizes = [8, 474], strides = [1, 1]} : vector<8x512xf32> to vector<8x474xf32>
    %20 = arith.addf %15, %19 : vector<8x474xf32>
    %c4 = arith.constant 4 : index
    %c0_15 = arith.constant 0 : index
    %c0_16 = arith.constant 0 : index
    %21 = vector.load %arg2[%c4, %c0_15, %c0_16] : memref<9x8x4xbf16, #tpu.memory_space<vmem>>, vector<1x8x4xbf16>
    %22 = vector.shape_cast %21 : vector<1x8x4xbf16> to vector<8x4xbf16>
    %cst_17 = arith.constant dense<0.000000e+00> : vector<8x512xf32>
    %23 = tpu.matmul %22, %1, %cst_17 {dimension_numbers = #tpu.dot_dimension_numbers<[1], [0], [0], [1], [0, 0, 1, 1], [], []>} : vector<8x4xbf16>, vector<4x512xbf16>, vector<8x512xf32> -> vector<8x512xf32>
    %24 = vector.extract_strided_slice %23 {offsets = [0, 19], sizes = [8, 474], strides = [1, 1]} : vector<8x512xf32> to vector<8x474xf32>
    %25 = arith.addf %20, %24 : vector<8x474xf32>
    %c5 = arith.constant 5 : index
    %c0_18 = arith.constant 0 : index
    %c0_19 = arith.constant 0 : index
    %26 = vector.load %arg2[%c5, %c0_18, %c0_19] : memref<9x8x4xbf16, #tpu.memory_space<vmem>>, vector<1x8x4xbf16>
    %27 = vector.shape_cast %26 : vector<1x8x4xbf16> to vector<8x4xbf16>
    %cst_20 = arith.constant dense<0.000000e+00> : vector<8x512xf32>
    %28 = tpu.matmul %27, %1, %cst_20 {dimension_numbers = #tpu.dot_dimension_numbers<[1], [0], [0], [1], [0, 0, 1, 1], [], []>} : vector<8x4xbf16>, vector<4x512xbf16>, vector<8x512xf32> -> vector<8x512xf32>
    %29 = vector.extract_strided_slice %28 {offsets = [0, 20], sizes = [8, 474], strides = [1, 1]} : vector<8x512xf32> to vector<8x474xf32>
    %30 = arith.addf %25, %29 : vector<8x474xf32>
    %c6 = arith.constant 6 : index
    %c0_21 = arith.constant 0 : index
    %c0_22 = arith.constant 0 : index
    %31 = vector.load %arg2[%c6, %c0_21, %c0_22] : memref<9x8x4xbf16, #tpu.memory_space<vmem>>, vector<1x8x4xbf16>
    %32 = vector.shape_cast %31 : vector<1x8x4xbf16> to vector<8x4xbf16>
    %cst_23 = arith.constant dense<0.000000e+00> : vector<8x512xf32>
    %33 = tpu.matmul %32, %1, %cst_23 {dimension_numbers = #tpu.dot_dimension_numbers<[1], [0], [0], [1], [0, 0, 1, 1], [], []>} : vector<8x4xbf16>, vector<4x512xbf16>, vector<8x512xf32> -> vector<8x512xf32>
    %34 = vector.extract_strided_slice %33 {offsets = [0, 36], sizes = [8, 474], strides = [1, 1]} : vector<8x512xf32> to vector<8x474xf32>
    %35 = arith.addf %30, %34 : vector<8x474xf32>
    %c7 = arith.constant 7 : index
    %c0_24 = arith.constant 0 : index
    %c0_25 = arith.constant 0 : index
    %36 = vector.load %arg2[%c7, %c0_24, %c0_25] : memref<9x8x4xbf16, #tpu.memory_space<vmem>>, vector<1x8x4xbf16>
    %37 = vector.shape_cast %36 : vector<1x8x4xbf16> to vector<8x4xbf16>
    %cst_26 = arith.constant dense<0.000000e+00> : vector<8x512xf32>
    %38 = tpu.matmul %37, %1, %cst_26 {dimension_numbers = #tpu.dot_dimension_numbers<[1], [0], [0], [1], [0, 0, 1, 1], [], []>} : vector<8x4xbf16>, vector<4x512xbf16>, vector<8x512xf32> -> vector<8x512xf32>
    %39 = vector.extract_strided_slice %38 {offsets = [0, 37], sizes = [8, 474], strides = [1, 1]} : vector<8x512xf32> to vector<8x474xf32>
    %40 = arith.addf %35, %39 : vector<8x474xf32>
    %c8 = arith.constant 8 : index
    %c0_27 = arith.constant 0 : index
    %c0_28 = arith.constant 0 : index
    %41 = vector.load %arg2[%c8, %c0_27, %c0_28] : memref<9x8x4xbf16, #tpu.memory_space<vmem>>, vector<1x8x4xbf16>
    %42 = vector.shape_cast %41 : vector<1x8x4xbf16> to vector<8x4xbf16>
    %cst_29 = arith.constant dense<0.000000e+00> : vector<8x512xf32>
    %43 = tpu.matmul %42, %1, %cst_29 {dimension_numbers = #tpu.dot_dimension_numbers<[1], [0], [0], [1], [0, 0, 1, 1], [], []>} : vector<8x4xbf16>, vector<4x512xbf16>, vector<8x512xf32> -> vector<8x512xf32>
    %44 = vector.extract_strided_slice %43 {offsets = [0, 38], sizes = [8, 474], strides = [1, 1]} : vector<8x512xf32> to vector<8x474xf32>
    %45 = arith.addf %40, %44 : vector<8x474xf32>
    %c0_30 = arith.constant 0 : index
    %c0_31 = arith.constant 0 : index
    %46 = vector.load %arg3[%c0_30, %c0_31] : memref<8x1xf32, #tpu.memory_space<vmem>>, vector<8x1xf32>
    %47 = vector.broadcast %46 : vector<8x1xf32> to vector<8x474xf32>
    %48 = arith.addf %45, %47 : vector<8x474xf32>
    %cst_32 = arith.constant 0.000000e+00 : f32
    %49 = vector.broadcast %cst_32 : f32 to vector<8x474xf32>
    %50 = arith.maximumf %48, %49 : vector<8x474xf32>
    %51 = vector.extract_strided_slice %50 {offsets = [0, 0], sizes = [8, 384], strides = [1, 1]} : vector<8x474xf32> to vector<8x384xf32>
    %52 = vector.extract_strided_slice %50 {offsets = [0, 1], sizes = [8, 384], strides = [1, 1]} : vector<8x474xf32> to vector<8x384xf32>
    %53 = arith.maximumf %51, %52 : vector<8x384xf32>
    %54 = vector.extract_strided_slice %50 {offsets = [0, 18], sizes = [8, 384], strides = [1, 1]} : vector<8x474xf32> to vector<8x384xf32>
    %55 = arith.maximumf %53, %54 : vector<8x384xf32>
    %56 = vector.extract_strided_slice %50 {offsets = [0, 19], sizes = [8, 384], strides = [1, 1]} : vector<8x474xf32> to vector<8x384xf32>
    %57 = arith.maximumf %55, %56 : vector<8x384xf32>
    %c0_33 = arith.constant 0 : index
    %c0_34 = arith.constant 0 : index
    %c0_35 = arith.constant 0 : index
    %58 = vector.load %arg4[%c0_33, %c0_34, %c0_35] : memref<1x8x384xf32, #tpu.memory_space<vmem>>, vector<1x8x384xf32>
    %59 = vector.shape_cast %58 : vector<1x8x384xf32> to vector<8x384xf32>
    %60 = vector.shape_cast %57 : vector<8x384xf32> to vector<1x8x384xf32>
    tpu.vector_store %arg4[%c0_33, %c0_34, %c0_35], %60 {strides = array<i32>} : memref<1x8x384xf32, #tpu.memory_space<vmem>>, vector<1x8x384xf32>,
    return
  }
  func.func @transform_0(%arg0: i32) -> (i32, i32, i32, i32) {
    %c0_i32 = arith.constant 0 : i32
    %c0_i32_0 = arith.constant 0 : i32
    %c0_i32_1 = arith.constant 0 : i32
    %c0_i32_2 = arith.constant 0 : i32
    return %arg0, %c0_i32, %c0_i32_0, %c0_i32_1 : i32, i32, i32, i32
  }
  func.func @transform_1(%arg0: i32) -> (i32, i32, i32) {
    %c0_i32 = arith.constant 0 : i32
    %c0_i32_0 = arith.constant 0 : i32
    %c0_i32_1 = arith.constant 0 : i32
    %c0_i32_2 = arith.constant 0 : i32
    return %c0_i32, %c0_i32_0, %c0_i32_1 : i32, i32, i32
  }
  func.func @transform_2(%arg0: i32) -> (i32, i32) {
    %c0_i32 = arith.constant 0 : i32
    %c0_i32_0 = arith.constant 0 : i32
    %c0_i32_1 = arith.constant 0 : i32
    return %c0_i32, %c0_i32_0 : i32, i32
  }
  func.func @transform_3(%arg0: i32) -> (i32, i32, i32) {
    %c0_i32 = arith.constant 0 : i32
    %c0_i32_0 = arith.constant 0 : i32
    %c0_i32_1 = arith.constant 0 : i32
    return %arg0, %c0_i32, %c0_i32_0 : i32, i32, i32
  }
}

</mosaic_0001>

<bundles_post_ra>
// kernel: a_call__.1
= control target key start
LH: loop header
LB: loop body
LE: loop exit
PB: predicated region body
PF: predicated region fallthrough
CT: control target
= control target key end

     0   :  { %s1420_s12 = smov 0   ;;  %s1651_s0 = inlined_call_operand.vmem [shape: bf16[2,1,4,512], index: 0, kind: input, shape index: {}]   ;;  %s1652_s1 = inlined_call_operand.vmem [shape: bf16[9,8,4], index: 1, kind: input, shape index: {}]   ;;  %s1653_s2 = inlined_call_operand.vmem [shape: f32[8,1], index: 2, kind: input, shape index: {}]   ;;  %s1654_s3 = inlined_call_operand.vmem [shape: f32[2,8,384], index: 3, kind: output, shape index: {}]  }
   0x1 LB: > { %s1306_s13 = sadd.s32 4294967295, %s1388_s12   ;;  %p1310_p0 = scmp.ge.s32.totalorder %s1388_s12, 1  ;;  %s1388_s12 = sphi %s1420_s12, %s13_s12  }
   0x2   : > { %p137_p1 = scmp.lt.s32.totalorder %s1388_s12, 3 }
   0x4   : > { %p138_p2 = pnand %p1310_p0, %p137_p1 }
   0x5   : > { %p161_p3 = scmp.lt.s32.totalorder (!%p138_p2), %s1306_s13, 1  ;;  %v179_v0 = vlaneseq (!%p138_p2)  ;;  %v1179_v1 = vld [vmem:[%s1653_s2] sm:$0xff] (!%p138_p2)  ;;  %v1390_v2 = vmov (!%p138_p2), 1983009808   ;;  %v1391_v4 = vmov (!%p138_p2), 0   ;;  %vm196_vm0 = vcmask (!%p138_p2), 1041408  }
   0x6   : > { %141 = sbr.rel (%p138_p2) target bundleno = 568 (0x238), region = 32  ;;  %v177_v3 = vunpack.c.l.s4 (!%p138_p2), %v1390_v2  ;;  %241 = vmatprep.mubr.bf16.mxu0 (!%p138_p2), %v1391_v4  ;;  %282 = vmatprep.mubr.bf16.mxu1 (!%p138_p2), %v1391_v4  ;;  %v173_v16 = vld [vmem:[%s1652_s1] sm:$0xf] (!%p138_p2)  ;;  %vm192_vm1 = vcmask (!%p138_p2), 31744   ;;  %v1318_v17 = vld [vmem:[%s1652_s1 + $0x4] sm:$0xf] (!%p138_p2) }
   0x7   : > { %v180_v5 = vshrl.u32 (!%p138_p2), %v179_v0, 7  ;;  %1380 = vset.pattern.permute.xlu0 (!%p138_p2), %v1391_v4  ;;  %v1323_v18 = vld [vmem:[%s1652_s1 + $0x8] sm:$0xf] (!%p138_p2)  ;;  %v1328_v19 = vld [vmem:[%s1652_s1 + $0xc] sm:$0xf] (!%p138_p2)  ;;  %s1392_s11 = smov (!%p138_p2), 127  }
   0x8   : > { %v178_v6 = vunpack.c.0.s8 (!%p138_p2), %v177_v3  ;;  %1182 = vperm.xlu0 (!%p138_p2), %1380, %v1179_v1   ;;  %v1333_v20 = vld [vmem:[%s1652_s1 + $0x10] sm:$0xf] (!%p138_p2)  ;;  %v1338_v21 = vld [vmem:[%s1652_s1 + $0x14] sm:$0xf] (!%p138_p2)  ;;  %v1343_v22 = vld [vmem:[%s1652_s1 + $0x18] sm:$0xf] (!%p138_p2) }
   0x9   : > { %v1348_v23 = vld [vmem:[%s1652_s1 + $0x1c] sm:$0xf] (!%p138_p2)  ;;  %v1353_v24 = vld [vmem:[%s1652_s1 + $0x20] sm:$0xf] (!%p138_p2)  ;;  %s1393_s14 = smov (!%p138_p2), 126   ;;  %s1394_s15 = smov (!%p138_p2), 110  }
   0xa   : > { %v181_v7 = vsub.s32 (!%p138_p2), %v178_v6, %v180_v5  ;;  %s1396_s17 = smov (!%p138_p2), 108   ;;  %s1397_s18 = smov (!%p138_p2), 92   ;;  %vm390_vm2 = vcmask (!%p138_p2), 1039360   ;;  %vm501_vm3 = vcmask (!%p138_p2), 1031168   ;;  %vm612_vm4 = vcmask (!%p138_p2), 900096  }
   0xb   : > { %s1399_s20 = smov (!%p138_p2), 90   ;;  %vm723_vm5 = vcmask (!%p138_p2), 891904   ;;  %vm834_vm6 = vcmask (!%p138_p2), 883712   ;;  %vm945_vm7 = vcmask (!%p138_p2), 752640   ;;  %vm1056_vm8 = vcmask (!%p138_p2), 744448  }
   0xc   : > { %vm1167_vm9 = vcmask (!%p138_p2), 736256  }
   0xd   : > { %s1656_s13 = smov (!%p161_p3, %s1306_s13), 1 }
   0xe   : > { %s1360_s16 = sshll.u32 %s1656_s13, 3  ;;  %s1361_s21 = smul.u32 24, %s1656_s13 }
   0xf   : > { %s165_s19 = scalar_lea.vmem %s1651_s0, %s1360_s16  ;;  %s1395_s16 = smov 109  }
  0x10   : > { %v172_v8 = vld [vmem:[%s165_s19] sm:$0xff]  ;;  %s1398_s19 = smov 91   ;;  %s170_s24 = scalar_lea.vmem %s1654_s3, %s1361_s21 }
  0x11   : > { %v182_v9 = vrot.slane %v172_v8, %v181_v7  ;;  %v175_v10 = vcombine.high %v172_v8, %v172_v8 }
  0x13   : > { %v1440_v11 = vcombine.high %v182_v9, %v182_v9  ;;  %v1443_v12 = vsel %vm196_vm0, %v182_v9, 0  ;;  %v189_v13 = vrot.slane %v175_v10, %v181_v7 }
  0x15   : > { %1314 = vmatprep.subr.msk.bf16.mxu0 %vm196_vm0, %v1440_v11  ;;  %v1447_v14 = vcombine.high %v189_v13, %v189_v13  ;;  %v1450_v15 = vsel %vm196_vm0, %v189_v13, 0 }
  0x16   : > { %210 = vmatpush1.bf16.msra.mxu0 %v1443_v12 }
  0x17   : > { %1316 = vmatprep.subr.msk.bf16.mxu1 %vm196_vm0, %v1447_v14  ;;  %1319 = vmatprep.subr.msk.bf16.mxu0 %vm196_vm0, %v1440_v11 }
  0x18   : > { %251 = vmatpush1.bf16.msra.mxu1 %v1450_v15 }
  0x19   : > { %1315 = vmatmul.mubr.msk.bf16.vlgmr.msra.gmra.mrb[0].mxu0 %vm192_vm1, %v173_v16  ;;  %1321 = vmatprep.subr.msk.bf16.mxu1 %vm196_vm0, %v1447_v14 }
  0x1a   : > { %297 = vmatpush1.bf16.msra.mxu0 %v1443_v12  ;;  %328 = vmatprep.mubr.bf16.mxu0 %v1391_v4 }
  0x1b   : > { %1317 = vmatmul.mubr.msk.bf16.vlgmr.msra.gmra.mrb[0].mxu1 %vm192_vm1, %v173_v16  ;;  %1324 = vmatprep.subr.msk.bf16.mxu0 %vm196_vm0, %v1440_v11 }
  0x1c   : > { %338 = vmatpush1.bf16.msra.mxu1 %v1450_v15  ;;  %369 = vmatprep.mubr.bf16.mxu1 %v1391_v4 }
  0x1d   : > { %1326 = vmatprep.subr.msk.bf16.mxu1 %vm196_vm0, %v1447_v14 }
  0x21   : > { %1320 = vmatmul.mubr.msk.bf16.vlgmr.msra.gmra.mrb[4].mxu0 %vm192_vm1, %v1318_v17 }
  0x22   : > { %408 = vmatpush1.bf16.msra.mxu0 %v1443_v12  ;;  %439 = vmatprep.mubr.bf16.mxu0 %v1391_v4 }
  0x23   : > { %1322 = vmatmul.mubr.msk.bf16.vlgmr.msra.gmra.mrb[4].mxu1 %vm192_vm1, %v1318_v17  ;;  %1329 = vmatprep.subr.msk.bf16.mxu0 %vm196_vm0, %v1440_v11 }
  0x24   : > { %449 = vmatpush1.bf16.msra.mxu1 %v1450_v15  ;;  %480 = vmatprep.mubr.bf16.mxu1 %v1391_v4 }
  0x25   : > { %1331 = vmatprep.subr.msk.bf16.mxu1 %vm196_vm0, %v1447_v14 }
  0x29   : > { %1325 = vmatmul.mubr.msk.bf16.vlgmr.msra.gmra.mrb[8].mxu0 %vm192_vm1, %v1323_v18 }
  0x2a   : > { %519 = vmatpush1.bf16.msra.mxu0 %v1443_v12  ;;  %550 = vmatprep.mubr.bf16.mxu0 %v1391_v4 }
  0x2b   : > { %1327 = vmatmul.mubr.msk.bf16.vlgmr.msra.gmra.mrb[8].mxu1 %vm192_vm1, %v1323_v18  ;;  %1334 = vmatprep.subr.msk.bf16.mxu0 %vm196_vm0, %v1440_v11 }
  0x2c   : > { %560 = vmatpush1.bf16.msra.mxu1 %v1450_v15  ;;  %591 = vmatprep.mubr.bf16.mxu1 %v1391_v4 }
  0x2d   : > { %1336 = vmatprep.subr.msk.bf16.mxu1 %vm196_vm0, %v1447_v14 }
  0x31   : > { %1330 = vmatmul.mubr.msk.bf16.vlgmr.msra.gmra.mrb[12].mxu0 %vm192_vm1, %v1328_v19 }
  0x32   : > { %630 = vmatpush1.bf16.msra.mxu0 %v1443_v12  ;;  %661 = vmatprep.mubr.bf16.mxu0 %v1391_v4 }
  0x33   : > { %1332 = vmatmul.mubr.msk.bf16.vlgmr.msra.gmra.mrb[12].mxu1 %vm192_vm1, %v1328_v19  ;;  %1339 = vmatprep.subr.msk.bf16.mxu0 %vm196_vm0, %v1440_v11 }
  0x34   : > { %671 = vmatpush1.bf16.msra.mxu1 %v1450_v15  ;;  %702 = vmatprep.mubr.bf16.mxu1 %v1391_v4 }
  0x35   : > { %1341 = vmatprep.subr.msk.bf16.mxu1 %vm196_vm0, %v1447_v14 }
  0x39   : > { %1335 = vmatmul.mubr.msk.bf16.vlgmr.msra.gmra.mrb[16].mxu0 %vm192_vm1, %v1333_v20 }
  0x3a   : > { %741 = vmatpush1.bf16.msra.mxu0 %v1443_v12  ;;  %772 = vmatprep.mubr.bf16.mxu0 %v1391_v4 }
  0x3b   : > { %1337 = vmatmul.mubr.msk.bf16.vlgmr.msra.gmra.mrb[16].mxu1 %vm192_vm1, %v1333_v20  ;;  %1344 = vmatprep.subr.msk.bf16.mxu0 %vm196_vm0, %v1440_v11 }
  0x3c   : > { %782 = vmatpush1.bf16.msra.mxu1 %v1450_v15  ;;  %813 = vmatprep.mubr.bf16.mxu1 %v1391_v4 }
  0x3d   : > { %1346 = vmatprep.subr.msk.bf16.mxu1 %vm196_vm0, %v1447_v14 }
  0x41   : > { %1340 = vmatmul.mubr.msk.bf16.vlgmr.msra.gmra.mrb[20].mxu0 %vm192_vm1, %v1338_v21 }
  0x42   : > { %852 = vmatpush1.bf16.msra.mxu0 %v1443_v12  ;;  %883 = vmatprep.mubr.bf16.mxu0 %v1391_v4 }
  0x43   : > { %1342 = vmatmul.mubr.msk.bf16.vlgmr.msra.gmra.mrb[20].mxu1 %vm192_vm1, %v1338_v21  ;;  %1349 = vmatprep.subr.msk.bf16.mxu0 %vm196_vm0, %v1440_v11 }
  0x44   : > { %893 = vmatpush1.bf16.msra.mxu1 %v1450_v15  ;;  %924 = vmatprep.mubr.bf16.mxu1 %v1391_v4 }
  0x45   : > { %1351 = vmatprep.subr.msk.bf16.mxu1 %vm196_vm0, %v1447_v14 }
  0x49   : > { %1345 = vmatmul.mubr.msk.bf16.vlgmr.msra.gmra.mrb[24].mxu0 %vm192_vm1, %v1343_v22 }
  0x4a   : > { %963 = vmatpush1.bf16.msra.mxu0 %v1443_v12  ;;  %994 = vmatprep.mubr.bf16.mxu0 %v1391_v4 }
  0x4b   : > { %1347 = vmatmul.mubr.msk.bf16.vlgmr.msra.gmra.mrb[24].mxu1 %vm192_vm1, %v1343_v22  ;;  %1354 = vmatprep.subr.msk.bf16.mxu0 %vm196_vm0, %v1440_v11 }
  0x4c   : > { %1004 = vmatpush1.bf16.msra.mxu1 %v1450_v15  ;;  %1035 = vmatprep.mubr.bf16.mxu1 %v1391_v4 }
  0x4d   : > { %1356 = vmatprep.subr.msk.bf16.mxu1 %vm196_vm0, %v1447_v14 }
  0x51   : > { %1350 = vmatmul.mubr.msk.bf16.vlgmr.msra.gmra.mrb[28].mxu0 %vm192_vm1, %v1348_v23 }
  0x52   : > { %1074 = vmatpush1.bf16.msra.mxu0 %v1443_v12  ;;  %1105 = vmatprep.mubr.bf16.mxu0 %v1391_v4 }
  0x53   : > { %1352 = vmatmul.mubr.msk.bf16.vlgmr.msra.gmra.mrb[28].mxu1 %vm192_vm1, %v1348_v23 }
  0x54   : > { %1115 = vmatpush1.bf16.msra.mxu1 %v1450_v15  ;;  %1146 = vmatprep.mubr.bf16.mxu1 %v1391_v4 }
  0x59   : > { %1355 = vmatmul.mubr.msk.bf16.vlgmr.msra.gmra.mrb[32].mxu0 %vm192_vm1, %v1353_v24 }
  0x5b   : > { %1357 = vmatmul.mubr.msk.bf16.vlgmr.msra.gmra.mrb[32].mxu1 %vm192_vm1, %v1353_v24 }
  0xec   : > { %v1565_v25 = vpop.f32.mrb[0].mxu0 }
  0xed   : > { %v1567_v26 = vpop.f32.mrb[1].mxu0 }
  0xee   : > { %v247_v27 = vpop.f32.mrb[2].mxu0  ;;  %v1569_v28 = vpop.f32.mrb[0].mxu1 }
  0xef   : > { %v248_v29 = vpop.f32.mrb[3].mxu0  ;;  %v1571_v30 = vpop.f32.mrb[1].mxu1 }
  0xf0   : > { %v288_v31 = vpop.f32.mrb[2].mxu1 }
  0xf1   : > { %v289_v32 = vpop.f32.mrb[3].mxu1 }
  0xf4   : > { %v330_v33 = vpop.f32.mrb[4].mxu0 }
  0xf5   : > { %382 = vrot.lane.b32.xlu0 %v330_v33, %s1392_s11  ;;  %v332_v34 = vpop.f32.mrb[5].mxu0 }
  0xf6   : > { %v334_v35 = vpop.f32.mrb[6].mxu0  ;;  %v371_v36 = vpop.f32.mrb[4].mxu1 }
  0xf7   : > { %v335_v37 = vpop.f32.mrb[7].mxu0  ;;  %386 = vrot.lane.b32.xlu1 %v371_v36, %s1392_s11  ;;  %v373_v38 = vpop.f32.mrb[5].mxu1 }
  0xf8   : > { %v375_v39 = vpop.f32.mrb[6].mxu1  ;;  %v1585_v37 = vpop.permute.xlu0 %1182 }
  0xf9   : > { %384 = vrot.lane.b32.xlu0 %v332_v34, %s1392_s11  ;;  %v376_v40 = vpop.f32.mrb[7].mxu1 }
  0xfb   : > { %388 = vrot.lane.b32.xlu1 %v373_v38, %s1392_s11 }
  0xfc   : > { %v441_v41 = vpop.f32.mrb[8].mxu0 }
  0xfd   : > { %493 = vrot.lane.b32.xlu0 %v441_v41, %s1393_s14  ;;  %v443_v42 = vpop.f32.mrb[9].mxu0 }
  0xfe   : > { %v445_v43 = vpop.f32.mrb[10].mxu0  ;;  %v482_v44 = vpop.f32.mrb[8].mxu1 }
  0xff   : > { %v446_v45 = vpop.f32.mrb[11].mxu0  ;;  %495 = vrot.lane.b32.xlu1 %v443_v42, %s1393_s14  ;;  %v484_v46 = vpop.f32.mrb[9].mxu1 }
 0x100   : > { %v486_v47 = vpop.f32.mrb[10].mxu1 }
 0x101   : > { %497 = vrot.lane.b32.xlu0 %v482_v44, %s1393_s14  ;;  %v487_v48 = vpop.f32.mrb[11].mxu1 }
 0x103   : > { %499 = vrot.lane.b32.xlu1 %v484_v46, %s1393_s14 }
 0x104   : > { %v552_v49 = vpop.f32.mrb[12].mxu0 }
 0x105   : > { %v554_v50 = vpop.f32.mrb[13].mxu0  ;;  %604 = vrot.lane.b32.xlu0 %v552_v49, %s1394_s15 }
 0x106   : > { %v556_v51 = vpop.f32.mrb[14].mxu0  ;;  %v593_v52 = vpop.f32.mrb[12].mxu1 }
 0x107   : > { %v557_v53 = vpop.f32.mrb[15].mxu0  ;;  %606 = vrot.lane.b32.xlu1 %v554_v50, %s1394_s15  ;;  %v595_v54 = vpop.f32.mrb[13].mxu1 }
 0x108   : > { %v597_v55 = vpop.f32.mrb[14].mxu1 }
 0x109   : > { %608 = vrot.lane.b32.xlu0 %v593_v52, %s1394_s15  ;;  %v598_v56 = vpop.f32.mrb[15].mxu1 }
 0x10b   : > { %610 = vrot.lane.b32.xlu1 %v595_v54, %s1394_s15 }
 0x10c   : > { %v663_v57 = vpop.f32.mrb[16].mxu0 }
 0x10d   : > { %v665_v58 = vpop.f32.mrb[17].mxu0  ;;  %715 = vrot.lane.b32.xlu0 %v663_v57, %s1395_s16 }
 0x10e   : > { %v667_v59 = vpop.f32.mrb[18].mxu0  ;;  %v704_v60 = vpop.f32.mrb[16].mxu1 }
 0x10f   : > { %v668_v61 = vpop.f32.mrb[19].mxu0  ;;  %717 = vrot.lane.b32.xlu1 %v665_v58, %s1395_s16  ;;  %v706_v62 = vpop.f32.mrb[17].mxu1 }
 0x110   : > { %v708_v63 = vpop.f32.mrb[18].mxu1 }
 0x111   : > { %719 = vrot.lane.b32.xlu0 %v704_v60, %s1395_s16  ;;  %v709_v0 = vpop.f32.mrb[19].mxu1 }
 0x113   : > { %721 = vrot.lane.b32.xlu1 %v706_v62, %s1395_s16 }
 0x114   : > { %v774_v1 = vpop.f32.mrb[20].mxu0 }
 0x115   : > { %v776_v2 = vpop.f32.mrb[21].mxu0  ;;  %826 = vrot.lane.b32.xlu0 %v774_v1, %s1396_s17 }
 0x116   : > { %v778_v3 = vpop.f32.mrb[22].mxu0  ;;  %v815_v4 = vpop.f32.mrb[20].mxu1 }
 0x117   : > { %v779_v5 = vpop.f32.mrb[23].mxu0  ;;  %828 = vrot.lane.b32.xlu1 %v776_v2, %s1396_s17  ;;  %v817_v6 = vpop.f32.mrb[21].mxu1 }
 0x118   : > { %v819_v7 = vpop.f32.mrb[22].mxu1 }
 0x119   : > { %830 = vrot.lane.b32.xlu0 %v815_v4, %s1396_s17  ;;  %v820_v8 = vpop.f32.mrb[23].mxu1 }
 0x11b   : > { %832 = vrot.lane.b32.xlu1 %v817_v6, %s1396_s17 }
 0x11c   : > { %v885_v9 = vpop.f32.mrb[24].mxu0 }
 0x11d   : > { %v887_v10 = vpop.f32.mrb[25].mxu0  ;;  %937 = vrot.lane.b32.xlu0 %v885_v9, %s1397_s18 }
 0x11e   : > { %v889_v11 = vpop.f32.mrb[26].mxu0  ;;  %v926_v12 = vpop.f32.mrb[24].mxu1 }
 0x11f   : > { %v890_v13 = vpop.f32.mrb[27].mxu0  ;;  %939 = vrot.lane.b32.xlu1 %v887_v10, %s1397_s18  ;;  %v928_v14 = vpop.f32.mrb[25].mxu1 }
 0x120   : > { %v930_v15 = vpop.f32.mrb[26].mxu1 }
 0x121   : > { %941 = vrot.lane.b32.xlu0 %v926_v12, %s1397_s18  ;;  %v931_v16 = vpop.f32.mrb[27].mxu1 }
 0x123   : > { %943 = vrot.lane.b32.xlu1 %v928_v14, %s1397_s18 }
 0x124   : > { %v996_v17 = vpop.f32.mrb[28].mxu0 }
 0x125   : > { %v998_v18 = vpop.f32.mrb[29].mxu0 }
 0x126   : > { %v1000_v19 = vpop.f32.mrb[30].mxu0  ;;  %v1037_v20 = vpop.f32.mrb[28].mxu1 }
 0x127   : > { %v1001_v21 = vpop.f32.mrb[31].mxu0  ;;  %1048 = vrot.lane.b32.xlu1 %v996_v17, %s1398_s19  ;;  %v1039_v22 = vpop.f32.mrb[29].mxu1  ;;  %1052 = vrot.lane.b32.xlu0 %v1037_v20, %s1398_s19 }
 0x128   : > { %v1041_v23 = vpop.f32.mrb[30].mxu1 }
 0x129   : > { %v1042_v24 = vpop.f32.mrb[31].mxu1 }
 0x12b   : > { %1050 = vrot.lane.b32.xlu1 %v998_v18, %s1398_s19 }
 0x12c   : > { %v1107_v27 = vpop.f32.mrb[32].mxu0 }
 0x12d   : > { %v1109_v29 = vpop.f32.mrb[33].mxu0  ;;  %1159 = vrot.lane.b32.xlu0 %v1107_v27, %s1399_s20 }
 0x12e   : > { %v1111_v31 = vpop.f32.mrb[34].mxu0  ;;  %v1148_v32 = vpop.f32.mrb[32].mxu1 }
 0x12f   : > { %v1112_v33 = vpop.f32.mrb[35].mxu0  ;;  %1054 = vrot.lane.b32.xlu1 %v1039_v22, %s1398_s19  ;;  %v1150_v34 = vpop.f32.mrb[33].mxu1 }
 0x130   : > { %v1152_v35 = vpop.f32.mrb[34].mxu1 }
 0x131   : > { %1163 = vrot.lane.b32.xlu0 %v1148_v32, %s1399_s20  ;;  %v1153_v36 = vpop.f32.mrb[35].mxu1 }
 0x133   : > { %1161 = vrot.lane.b32.xlu1 %v1109_v29, %s1399_s20 }
 0x137   : > { %1165 = vrot.lane.b32.xlu1 %v1150_v34, %s1399_s20 }
 0x167   : > { %v383_v38 = vpop.permute.xlu0 %382 }
 0x169   : > { %v387_v39 = vpop.permute.xlu1 %386 }
 0x16b   : > { %v385_v40 = vpop.permute.xlu0 %384 }
 0x16c   : > { %v391_v62 = vsel %vm390_vm2, %v383_v38, %v385_v40  ;;  %v392_v63 = vsel %vm390_vm2, %v385_v40, %v387_v39 }
 0x16d   : > { %v389_v41 = vpop.permute.xlu1 %388  ;;  %v398_v2 = vadd.f32 %v391_v62, %v1565_v25  ;;  %v399_v3 = vadd.f32 %v392_v63, %v1567_v26 }
 0x16e   : > { %v401_v10 = vadd.f32 %v389_v41, %v1571_v30  ;;  %v393_v14 = vsel %vm390_vm2, %v387_v39, %v389_v41 }
 0x16f   : > { %v494_v42 = vpop.permute.xlu0 %493  ;;  %v400_v24 = vadd.f32 %v393_v14, %v1569_v28 }
 0x171   : > { %v496_v43 = vpop.permute.xlu1 %495 }
 0x172   : > { %v502_v0 = vsel %vm501_vm3, %v494_v42, %v496_v43 }
 0x173   : > { %v498_v44 = vpop.permute.xlu0 %497  ;;  %v509_v8 = vadd.f32 %v502_v0, %v398_v2 }
 0x174   : > { %v503_v1 = vsel %vm501_vm3, %v496_v43, %v498_v44 }
 0x175   : > { %v500_v45 = vpop.permute.xlu1 %499  ;;  %v510_v9 = vadd.f32 %v503_v1, %v399_v3 }
 0x176   : > { %v512_v15 = vadd.f32 %v500_v45, %v401_v10  ;;  %v504_v30 = vsel %vm501_vm3, %v498_v44, %v500_v45 }
 0x177   : > { %v605_v46 = vpop.permute.xlu0 %604  ;;  %v511_v36 = vadd.f32 %v504_v30, %v400_v24 }
 0x179   : > { %v607_v47 = vpop.permute.xlu1 %606 }
 0x17a   : > { %v613_v6 = vsel %vm612_vm4, %v605_v46, %v607_v47 }
 0x17b   : > { %v609_v48 = vpop.permute.xlu0 %608  ;;  %v620_v13 = vadd.f32 %v613_v6, %v509_v8 }
 0x17c   : > { %v614_v7 = vsel %vm612_vm4, %v607_v47, %v609_v48 }
 0x17d   : > { %v611_v49 = vpop.permute.xlu1 %610  ;;  %v621_v25 = vadd.f32 %v614_v7, %v510_v9 }
 0x17e   : > { %v623_v21 = vadd.f32 %v611_v49, %v512_v15  ;;  %v615_v32 = vsel %vm612_vm4, %v609_v48, %v611_v49 }
 0x17f   : > { %v716_v50 = vpop.permute.xlu0 %715  ;;  %v622_v43 = vadd.f32 %v615_v32, %v511_v36 }
 0x181   : > { %v718_v51 = vpop.permute.xlu1 %717 }
 0x182   : > { %v724_v11 = vsel %vm723_vm5, %v716_v50, %v718_v51 }
 0x183   : > { %v720_v52 = vpop.permute.xlu0 %719  ;;  %v731_v18 = vadd.f32 %v724_v11, %v620_v13 }
 0x184   : > { %v725_v12 = vsel %vm723_vm5, %v718_v51, %v720_v52 }
 0x185   : > { %v722_v53 = vpop.permute.xlu1 %721  ;;  %v732_v19 = vadd.f32 %v725_v12, %v621_v25 }
 0x186   : > { %v734_v33 = vadd.f32 %v722_v53, %v623_v21  ;;  %v726_v41 = vsel %vm723_vm5, %v720_v52, %v722_v53 }
 0x187   : > { %v827_v54 = vpop.permute.xlu0 %826  ;;  %v733_v50 = vadd.f32 %v726_v41, %v622_v43 }
 0x189   : > { %v829_v55 = vpop.permute.xlu1 %828 }
 0x18a   : > { %v835_v16 = vsel %vm834_vm6, %v827_v54, %v829_v55 }
 0x18b   : > { %v831_v56 = vpop.permute.xlu0 %830  ;;  %v842_v27 = vadd.f32 %v835_v16, %v731_v18 }
 0x18c   : > { %v836_v17 = vsel %vm834_vm6, %v829_v55, %v831_v56 }
 0x18d   : > { %v833_v57 = vpop.permute.xlu1 %832  ;;  %v843_v29 = vadd.f32 %v836_v17, %v732_v19 }
 0x18e   : > { %v845_v42 = vadd.f32 %v833_v57, %v734_v33  ;;  %v837_v46 = vsel %vm834_vm6, %v831_v56, %v833_v57 }
 0x18f   : > { %v938_v58 = vpop.permute.xlu0 %937  ;;  %v844_v52 = vadd.f32 %v837_v46, %v733_v50 }
 0x191   : > { %v940_v59 = vpop.permute.xlu1 %939 }
 0x192   : > { %v946_v22 = vsel %vm945_vm7, %v938_v58, %v940_v59 }
 0x193   : > { %v1587_v60 = vpop.permute.xlu0 %941  ;;  %v953_v38 = vadd.f32 %v946_v22, %v842_v27 }
 0x194   : > { %v947_v23 = vsel %vm945_vm7, %v940_v59, %v1587_v60 }
 0x195   : > { %v944_v61 = vpop.permute.xlu1 %943  ;;  %v954_v39 = vadd.f32 %v947_v23, %v843_v29 }
 0x196   : > { %v956_v47 = vadd.f32 %v944_v61, %v845_v42  ;;  %v948_v55 = vsel %vm945_vm7, %v1587_v60, %v944_v61 }
 0x197   : > { %v955_v63 = vadd.f32 %v948_v55, %v844_v52 }
 0x199   : > { %v1049_v4 = vpop.permute.xlu1 %1048  ;;  %v1053_v5 = vpop.permute.xlu0 %1052 }
 0x19d   : > { %v1051_v26 = vpop.permute.xlu1 %1050 }
 0x19e   : > { %v1057_v34 = vsel %vm1056_vm8, %v1049_v4, %v1051_v26  ;;  %v1058_v35 = vsel %vm1056_vm8, %v1051_v26, %v1053_v5 }
 0x19f   : > { %v1160_v20 = vpop.permute.xlu0 %1159  ;;  %v1064_v28 = vadd.f32 %v1057_v34, %v953_v38  ;;  %v1065_v44 = vadd.f32 %v1058_v35, %v954_v39 }
 0x1a1   : > { %v1055_v31 = vpop.permute.xlu1 %1054 }
 0x1a2   : > { %v1067_v58 = vadd.f32 %v1055_v31, %v956_v47  ;;  %v1059_v56 = vsel %vm1056_vm8, %v1053_v5, %v1055_v31 }
 0x1a3   : > { %v1164_v40 = vpop.permute.xlu0 %1163  ;;  %v1066_v4 = vadd.f32 %v1059_v56, %v955_v63 }
 0x1a5   : > { %v1162_v45 = vpop.permute.xlu1 %1161 }
 0x1a6   : > { %v1168_v48 = vsel %vm1167_vm9, %v1160_v20, %v1162_v45  ;;  %v1169_v49 = vsel %vm1167_vm9, %v1162_v45, %v1164_v40 }
 0x1a7   : > { %v1175_v51 = vadd.f32 %v1168_v48, %v1064_v28  ;;  %v1176_v54 = vadd.f32 %v1169_v49, %v1065_v44 }
 0x1a9   : > { %v1185_v53 = vadd.f32 %v1585_v37, %v1175_v51  ;;  %v1186_v59 = vadd.f32 %v1585_v37, %v1176_v54  ;;  %v1166_v62 = vpop.permute.xlu1 %1165 }
 0x1aa   : > { %v1178_v57 = vadd.f32 %v1166_v62, %v1067_v58  ;;  %v1170_v2 = vsel %vm1167_vm9, %v1164_v40, %v1166_v62 }
 0x1ab   : > { %v1189_v0 = vmax.f32 %v1185_v53, 0.0  ;;  %v1190_v1 = vmax.f32 %v1186_v59, 0.0  ;;  %v1177_v61 = vadd.f32 %v1170_v2, %v1066_v4 }
 0x1ac   : > { %v1188_v3 = vadd.f32 %v1585_v37, %v1178_v57 }
 0x1ad   : > { %1197 = vrot.lane.b32.xlu0 %v1189_v0, %s1392_s11  ;;  %1199 = vrot.lane.b32.xlu1 %v1190_v1, %s1392_s11  ;;  %v1187_v5 = vadd.f32 %v1585_v37, %v1177_v61 }
 0x1ae   : > { %v1192_v60 = vmax.f32 %v1188_v3, 0.0 }
 0x1af   : > { %v1191_v6 = vmax.f32 %v1187_v5, 0.0 }
 0x1b1   : > { %1214 = vrot.lane.b32.xlu0 %v1189_v0, %s1394_s15  ;;  %1203 = vrot.lane.b32.xlu1 %v1192_v60, %s1392_s11 }
 0x1b5   : > { %1231 = vrot.lane.b32.xlu0 %v1189_v0, %s1395_s16  ;;  %1216 = vrot.lane.b32.xlu1 %v1190_v1, %s1394_s15 }
 0x1b9   : > { %1220 = vrot.lane.b32.xlu1 %v1192_v60, %s1394_s15  ;;  %1201 = vrot.lane.b32.xlu0 %v1191_v6, %s1392_s11 }
 0x1bd   : > { %1233 = vrot.lane.b32.xlu1 %v1190_v1, %s1395_s16  ;;  %1218 = vrot.lane.b32.xlu0 %v1191_v6, %s1394_s15 }
 0x1c1   : > { %1237 = vrot.lane.b32.xlu1 %v1192_v60, %s1395_s16  ;;  %1235 = vrot.lane.b32.xlu0 %v1191_v6, %s1395_s16 }
 0x21f   : > { %v1198_v7 = vpop.permute.xlu0 %1197  ;;  %v1200_v37 = vpop.permute.xlu1 %1199 }
 0x220   : > { %v1205_v12 = vsel %vm390_vm2, %v1198_v7, %v1200_v37 }
 0x221   : > { %v1211_v14 = vmax.f32 %v1189_v0, %v1205_v12 }
 0x223   : > { %v1215_v8 = vpop.permute.xlu0 %1214  ;;  %v1204_v9 = vpop.permute.xlu1 %1203 }
 0x227   : > { %v1232_v10 = vpop.permute.xlu0 %1231  ;;  %v1217_v11 = vpop.permute.xlu1 %1216 }
 0x228   : > { %v1222_v26 = vsel %vm612_vm4, %v1215_v8, %v1217_v11 }
 0x229   : > { %v1228_v17 = vmax.f32 %v1211_v14, %v1222_v26 }
 0x22b   : > { %v1202_v13 = vpop.permute.xlu0 %1201  ;;  %v1221_v25 = vpop.permute.xlu1 %1220 }
 0x22c   : > { %v1206_v15 = vsel %vm390_vm2, %v1200_v37, %v1202_v13  ;;  %v1207_v16 = vsel %vm390_vm2, %v1202_v13, %v1204_v9 }
 0x22d   : > { %v1212_v22 = vmax.f32 %v1190_v1, %v1206_v15  ;;  %v1213_v23 = vmax.f32 %v1191_v6, %v1207_v16 }
 0x22f   : > { %v1219_v18 = vpop.permute.xlu0 %1218  ;;  %v1234_v19 = vpop.permute.xlu1 %1233 }
 0x230   : > { %v1223_v20 = vsel %vm612_vm4, %v1217_v11, %v1219_v18  ;;  %v1224_v30 = vsel %vm612_vm4, %v1219_v18, %v1221_v25  ;;  %v1239_v21 = vsel %vm723_vm5, %v1232_v10, %v1234_v19 }
 0x231   : > { %v1245_v24 = vmax.f32 %v1228_v17, %v1239_v21  ;;  %v1229_v27 = vmax.f32 %v1212_v22, %v1223_v20  ;;  %v1230_v29 = vmax.f32 %v1213_v23, %v1224_v30 }
 0x233   : > { %1248 = vst [vmem:[%s170_s24] sm:$0xff] %v1245_v24  ;;  %v1236_v31 = vpop.permute.xlu0 %1235  ;;  %v1238_v32 = vpop.permute.xlu1 %1237 }
 0x234   : > { %v1240_v33 = vsel %vm723_vm5, %v1234_v19, %v1236_v31  ;;  %v1241_v34 = vsel %vm723_vm5, %v1236_v31, %v1238_v32 }
 0x235   : > { %v1246_v35 = vmax.f32 %v1229_v27, %v1240_v33  ;;  %v1247_v36 = vmax.f32 %v1230_v29, %v1241_v34 }
 0x237   : > { %1249 = vst [vmem:[%s170_s24 + $0x8] sm:$0xff] %v1246_v35  ;;  %1250 = vst [vmem:[%s170_s24 + $0x10] sm:$0xff] %v1247_v36 }
 0x238 PF: > { %s13_s12 = sadd.s32 1, %s1388_s12  }
 0x239   : > { %p10_p4 = scmp.ge.s32.totalorder %s13_s12, 4  }
 0x23b   :  { %12 = sbr.rel (!%p10_p4) target bundleno = 1 (0x1), region = 70 }

</bundles_post_ra>
